<compile_context>
chip_gen: v5e
topology: v5e:2x2
jax: 0.10.0
libtpu: 0.0.40
codegen_flags: <defaults>
</compile_context>

<pallas_src>
import functools

import jax
import jax.numpy as jnp
from jax.experimental import pallas as pl
from jax.experimental.pallas import tpu as pltpu


def _round_up(x, m):
    return ((x + m - 1) // m) * m


def _cal_off_encoder_kernel(h_ref, w_ref, b_ref, loc_ref, scale_ref, *, latent_dim):
    # One fused matmul for [mean | logvar]; f32 accumulation on the MXU.
    y = jnp.dot(h_ref[...], w_ref[...], preferred_element_type=jnp.float32)
    y = y + b_ref[...]                                   # bias kept in f32
    # Columns [0, L)   -> identity            (zd_loc)
    # Columns [L, 2L)  -> softplus(.) + 1e-7  (zd_scale); EUP work only on this half.
    loc_ref[...] = y[:, :latent_dim].astype(loc_ref.dtype)
    scale_ref[...] = (jax.nn.softplus(y[:, latent_dim:]) + 1e-7).astype(scale_ref.dtype)


def fuse_cal_off_params(w_mean, b_mean, w_logvar, b_logvar, compute_dtype):
    """One-time fusion of the two Linear layers' parameters.

    Hoist this out of training/inference loops (weights are static per call).
    """
    w = jnp.concatenate([w_mean, w_logvar], axis=1).astype(compute_dtype)
    b = jnp.concatenate([b_mean.reshape(-1), b_logvar.reshape(-1)])
    b = b.astype(jnp.float32).reshape(1, -1)
    return w, b


def cal_off_encoder_forward(x, w_mean, b_mean, w_logvar, b_logvar, x_dim,
                            *, block_rows=8192, fused_params=None):
    """CalOffEncoder forward.  x: any shape reshapeable to (-1, x_dim).

    Weights are (x_dim, latent_dim); biases are (latent_dim,).
    Returns (zd_loc, zd_scale), each of shape (B, latent_dim) in x's dtype.
    """
    latent_dim = w_mean.shape[1]
    n_fused = 2 * latent_dim

    h = x.reshape(-1, x_dim)                 # keep input dtype (no f32 upcast)
    B = h.shape[0]
    out_dtype = h.dtype

    if fused_params is None:
        fused_params = fuse_cal_off_params(w_mean, b_mean, w_logvar, b_logvar, h.dtype)
    w, b = fused_params

    # --- Row padding only to sublane alignment (multiple of 8). -------------
    b_pad = _round_up(max(B, 8), 8)
    if b_pad != B:
        h = jnp.pad(h, ((0, b_pad - B), (0, 0)))

    # --- Row tile: as large as a conservative VMEM budget allows. -----------
    # Double-buffered input tile + double-buffered (loc, scale) tiles + the
    # in-kernel f32 matmul result.  12 MiB keeps us safely inside v5e's 16 MiB
    # scoped default and leaves ample headroom on v7x (64 MiB physical).
    in_bytes = jnp.dtype(h.dtype).itemsize
    out_bytes = jnp.dtype(out_dtype).itemsize
    per_row = 2 * (x_dim * in_bytes + n_fused * out_bytes) + n_fused * 4
    vmem_budget = 12 * 1024 * 1024
    tb_cap = max(8, (vmem_budget // per_row) // 8 * 8)
    tb = min(max(8, (block_rows // 8) * 8), tb_cap, b_pad)
    nb = pl.cdiv(b_pad, tb)                  # ragged last block handled by Pallas

    loc, scale = pl.pallas_call(
        functools.partial(_cal_off_encoder_kernel, latent_dim=latent_dim),
        out_shape=(jax.ShapeDtypeStruct((b_pad, latent_dim), out_dtype),
                   jax.ShapeDtypeStruct((b_pad, latent_dim), out_dtype)),
        grid=(nb,),
        in_specs=[
            pl.BlockSpec((tb, x_dim), lambda i: (i, 0)),      # h: tiled rows
            pl.BlockSpec((x_dim, n_fused), lambda i: (0, 0)),  # fused W: resident
            pl.BlockSpec((1, n_fused), lambda i: (0, 0)),      # fused bias: resident
        ],
        out_specs=(
            pl.BlockSpec((tb, latent_dim), lambda i: (i, 0)),  # zd_loc
            pl.BlockSpec((tb, latent_dim), lambda i: (i, 0)),  # zd_scale
        ),
        compiler_params=pltpu.CompilerParams(
            dimension_semantics=("parallel",),
            vmem_limit_bytes=32 * 1024 * 1024),
    )(h, w, b)

    return loc[:B], scale[:B]


def _reference(x, w_mean, b_mean, w_logvar, b_logvar, x_dim):
    h = x.reshape(-1, x_dim).astype(jnp.float32)
    loc = h @ w_mean + b_mean
    scale = jax.nn.softplus(h @ w_logvar + b_logvar) + 1e-7
    return loc, scale


if __name__ == "__main__":
    # Small shapes consistent with the module: x of shape (2, 4, 16) flattened
    # to (-1, x_dim) with x_dim = 64, latent_dim = 32 -> h is (2, 64).
    x_dim = 64
    latent_dim = 32

    key = jax.random.PRNGKey(0)
    kx, kwm, kbm, kwl, kbl, kx2 = jax.random.split(key, 6)

    x = jax.random.normal(kx, (2, 4, 16), dtype=jnp.float32)

    # Deterministic "nn.Linear"-style init (uniform in +/- 1/sqrt(fan_in)).
    bound = 1.0 / jnp.sqrt(jnp.float32(x_dim))
    w_mean = jax.random.uniform(kwm, (x_dim, latent_dim), jnp.float32, -bound, bound)
    b_mean = jax.random.uniform(kbm, (latent_dim,), jnp.float32, -bound, bound)
    w_logvar = jax.random.uniform(kwl, (x_dim, latent_dim), jnp.float32, -bound, bound)
    b_logvar = jax.random.uniform(kbl, (latent_dim,), jnp.float32, -bound, bound)

    zd_loc, zd_scale = cal_off_encoder_forward(
        x, w_mean, b_mean, w_logvar, b_logvar, x_dim)
    jax.block_until_ready((zd_loc, zd_scale))

    ref_loc, ref_scale = _reference(x, w_mean, b_mean, w_logvar, b_logvar, x_dim)
    assert zd_loc.shape == (2, latent_dim) and zd_scale.shape == (2, latent_dim)
    assert jnp.allclose(zd_loc, ref_loc, atol=1e-5, rtol=1e-5)
    assert jnp.allclose(zd_scale, ref_scale, atol=1e-5, rtol=1e-5)

    # Second check: batch not a multiple of 8, single block under the default tile.
    x_big = jax.random.normal(kx2, (2050, x_dim), dtype=jnp.float32)
    loc_b, scale_b = cal_off_encoder_forward(
        x_big, w_mean, b_mean, w_logvar, b_logvar, x_dim)
    jax.block_until_ready((loc_b, scale_b))
    ref_loc_b, ref_scale_b = _reference(x_big, w_mean, b_mean, w_logvar, b_logvar, x_dim)
    assert jnp.allclose(loc_b, ref_loc_b, atol=1e-5, rtol=1e-5)
    assert jnp.allclose(scale_b, ref_scale_b, atol=1e-5, rtol=1e-5)

    # Third check: small block_rows to exercise the multi-step grid and the
    # ragged last block (2056 padded rows, tb=512 -> 5 blocks, last has 8 rows).
    loc_r, scale_r = cal_off_encoder_forward(
        x_big, w_mean, b_mean, w_logvar, b_logvar, x_dim, block_rows=512)
    jax.block_until_ready((loc_r, scale_r))
    assert jnp.allclose(loc_r, ref_loc_b, atol=1e-5, rtol=1e-5)
    assert jnp.allclose(scale_r, ref_scale_b, atol=1e-5, rtol=1e-5)

    print("KERNEL_OK")
</pallas_src>

<mosaic_0001>
module attributes {stable_mosaic.version = 11 : i64} {
  func.func @_cal_off_encoder_kernel(%arg0: i32, %arg1: memref<8x64xf32, #tpu.memory_space<vmem>>, %arg2: memref<64x64xf32, #tpu.memory_space<vmem>>, %arg3: memref<1x64xf32, #tpu.memory_space<vmem>>, %arg4: memref<8x32xf32, #tpu.memory_space<vmem>>, %arg5: memref<8x32xf32, #tpu.memory_space<vmem>>) attributes {dimension_semantics = [#tpu.dimension_semantics<parallel>], iteration_bounds = array<i64: 1>, scalar_prefetch = 0 : i64, scratch_operands = 0 : i64, tpu.core_type = #tpu.core_type<tc>, window_params = [{transform_indices = @transform_0, window_bounds = array<i64: 8, 64>}, {pipeline_mode = #tpu.pipeline_mode<synchronous>, transform_indices = @transform_1, window_bounds = array<i64: 64, 64>}, {pipeline_mode = #tpu.pipeline_mode<synchronous>, transform_indices = @transform_2, window_bounds = array<i64: 1, 64>}, {transform_indices = @transform_3, window_bounds = array<i64: 8, 32>}, {transform_indices = @transform_4, window_bounds = array<i64: 8, 32>}]} {
    %c0 = arith.constant 0 : index
    %c0_0 = arith.constant 0 : index
    %0 = vector.load %arg1[%c0, %c0_0] : memref<8x64xf32, #tpu.memory_space<vmem>>, vector<8x64xf32>
    %c0_1 = arith.constant 0 : index
    %c0_2 = arith.constant 0 : index
    %1 = vector.load %arg2[%c0_1, %c0_2] : memref<64x64xf32, #tpu.memory_space<vmem>>, vector<64x64xf32>
    %cst = arith.constant dense<0.000000e+00> : vector<8x64xf32>
    %2 = tpu.matmul %0, %1, %cst {dimension_numbers = #tpu.dot_dimension_numbers<[1], [0], [0], [1], [0, 0, 1, 1], [], []>} : vector<8x64xf32>, vector<64x64xf32>, vector<8x64xf32> -> vector<8x64xf32>
    %c0_3 = arith.constant 0 : index
    %c0_4 = arith.constant 0 : index
    %3 = vector.load %arg3[%c0_3, %c0_4] : memref<1x64xf32, #tpu.memory_space<vmem>>, vector<1x64xf32>
    %4 = vector.broadcast %3 : vector<1x64xf32> to vector<8x64xf32>
    %5 = arith.addf %2, %4 : vector<8x64xf32>
    %6 = vector.extract_strided_slice %5 {offsets = [0, 0], sizes = [8, 32], strides = [1, 1]} : vector<8x64xf32> to vector<8x32xf32>
    %c0_5 = arith.constant 0 : index
    %c0_6 = arith.constant 0 : index
    %7 = vector.load %arg4[%c0_5, %c0_6] : memref<8x32xf32, #tpu.memory_space<vmem>>, vector<8x32xf32>
    tpu.vector_store %arg4[%c0_5, %c0_6], %6 {strides = array<i32>} : memref<8x32xf32, #tpu.memory_space<vmem>>, vector<8x32xf32>,
    %8 = vector.extract_strided_slice %5 {offsets = [0, 32], sizes = [8, 32], strides = [1, 1]} : vector<8x64xf32> to vector<8x32xf32>
    %cst_7 = arith.constant 0.000000e+00 : f32
    %9 = vector.broadcast %cst_7 : f32 to vector<8x32xf32>
    %10 = arith.maximumf %8, %9 : vector<8x32xf32>
    %11 = vector.broadcast %cst_7 : f32 to vector<8x32xf32>
    %12 = arith.subf %8, %11 : vector<8x32xf32>
    %13 = arith.cmpf one, %12, %12 : vector<8x32xf32>
    %14 = vector.broadcast %cst_7 : f32 to vector<8x32xf32>
    %15 = arith.addf %8, %14 : vector<8x32xf32>
    %16 = math.absf %12 : vector<8x32xf32>
    %cst_8 = arith.constant 0.000000e+00 : f32
    %17 = vector.broadcast %cst_8 : f32 to vector<8x32xf32>
    %18 = arith.subf %17, %16 : vector<8x32xf32>
    %19 = math.exp %18 : vector<8x32xf32>
    %20 = math.log1p %19 : vector<8x32xf32>
    %21 = arith.addf %10, %20 : vector<8x32xf32>
    %22 = arith.select %13, %15, %21 : vector<8x32xi1>, vector<8x32xf32>
    %cst_9 = arith.constant 1.000000e-07 : f32
    %23 = vector.broadcast %cst_9 : f32 to vector<8x32xf32>
    %24 = arith.addf %22, %23 : vector<8x32xf32>
    %c0_10 = arith.constant 0 : index
    %c0_11 = arith.constant 0 : index
    %25 = vector.load %arg5[%c0_10, %c0_11] : memref<8x32xf32, #tpu.memory_space<vmem>>, vector<8x32xf32>
    tpu.vector_store %arg5[%c0_10, %c0_11], %24 {strides = array<i32>} : memref<8x32xf32, #tpu.memory_space<vmem>>, vector<8x32xf32>,
    return
  }
  func.func @transform_0(%arg0: i32) -> (i32, i32) {
    %c0_i32 = arith.constant 0 : i32
    %c0_i32_0 = arith.constant 0 : i32
    return %arg0, %c0_i32 : i32, i32
  }
  func.func @transform_1(%arg0: i32) -> (i32, i32) {
    %c0_i32 = arith.constant 0 : i32
    %c0_i32_0 = arith.constant 0 : i32
    %c0_i32_1 = arith.constant 0 : i32
    return %c0_i32, %c0_i32_0 : i32, i32
  }
  func.func @transform_2(%arg0: i32) -> (i32, i32) {
    %c0_i32 = arith.constant 0 : i32
    %c0_i32_0 = arith.constant 0 : i32
    %c0_i32_1 = arith.constant 0 : i32
    return %c0_i32, %c0_i32_0 : i32, i32
  }
  func.func @transform_3(%arg0: i32) -> (i32, i32) {
    %c0_i32 = arith.constant 0 : i32
    %c0_i32_0 = arith.constant 0 : i32
    return %arg0, %c0_i32 : i32, i32
  }
  func.func @transform_4(%arg0: i32) -> (i32, i32) {
    %c0_i32 = arith.constant 0 : i32
    %c0_i32_0 = arith.constant 0 : i32
    return %arg0, %c0_i32 : i32, i32
  }
}

</mosaic_0001>

<bundles_post_ra>
// kernel: tpu_custom_call.1
= control target key start
LH: loop header
LB: loop body
LE: loop exit
PB: predicated region body
PF: predicated region fallthrough
CT: control target
= control target key end

     0   :  { %10 = vsyncpa [#allocation3], 0  ;;  %s311_s0 = inlined_call_operand.hbm [shape: f32[8,64], index: 0, kind: input, shape index: {}]   ;;  %s312_s1 = inlined_call_operand.hbm [shape: f32[64,64], index: 1, kind: input, shape index: {}]   ;;  %s313_s2 = inlined_call_operand.vmem [shape: f32[1,64], index: 2, kind: input, shape index: {}]   ;;  %s314_s3 = inlined_call_operand.hbm [shape: f32[8,32], index: 3, kind: output, shape index: {0}]   ;;  %s315_s4 = inlined_call_operand.hbm [shape: f32[8,32], index: 4, kind: output, shape index: {1}]  }
   0x1   :  { %11 = vsyncpa [#allocation6], 0 }
   0x2   :  { %12 = vsyncpa [#allocation4], 0 }
   0x3   :  { %13 = vsyncpa [#allocation9], 0  ;;  %s19_s17 = sshll.u32 %s311_s0, 4  ;;  %s262_s18 = smov [#allocation2]   ;;  %s20_s17 = int_to_ptr.hbm [resolvable:$true] %s19_s17 }
   0x4   :  { %s21_s19 = sshll.u32 %s262_s18, 4  ;;  %s29_s22 = sshll.u32 %s312_s1, 4  ;;  %s22_s19 = int_to_ptr.vmem [resolvable:$true] %s21_s19  ;;  %s30_s22 = int_to_ptr.hbm [resolvable:$true] %s29_s22 }
   0x5   :  { %24 = dma.hbm_to_vmem [thread:$0]  %s20_s17, 128, %s22_s19, [#allocation3]  }
   0x6   :  { %s263_s23 = smov [#allocation5]   ;;  %s264_s25 = smov 128  }
   0x7   :  { %s31_s24 = sshll.u32 %s263_s23, 4  ;;  %s265_s26 = smov 8   ;;  %s32_s24 = int_to_ptr.vmem [resolvable:$true] %s31_s24 }
   0x8   :  { %37 = dma.hbm_to_vmem [thread:$0]  %s30_s22, 1024, %s32_s24, [#allocation6], %s264_s25, %s264_s25, %s265_s26  }
   0x9   :  { %254 = dma.done.wait [#allocation3], 128  }
   0xa   :  { %255 = vsyncadd [#allocation3], 4294967168 }
   0xb   :  { %256 = dma.done.wait [#allocation6], 1024  }
   0xc   :  { %257 = vsyncadd [#allocation6], 4294966272  ;;  %v56_v0 = vld [vmem:[#allocation5 + $0x38] sm:$0xff]  ;;  %v55_v1 = vld [vmem:[#allocation5 + $0x30] sm:$0xff]  ;;  %vm61_vm0 = vcmask 523264   ;;  %vm85_vm1 = vcmask 261120  }
   0xd   :  { %73 = vmatpush.msra.mxu0 %v56_v0  ;;  %v54_v2 = vld [vmem:[#allocation5 + $0x28] sm:$0xff]  ;;  %v53_v3 = vld [vmem:[#allocation5 + $0x20] sm:$0xff]  ;;  %v52_v4 = vld [vmem:[#allocation5 + $0x18] sm:$0xff]  ;;  %s266_s27 = smov [#allocation7]   ;;  %s118_s5 = sshll.u32 %s314_s3, 4  ;;  %s119_s5 = int_to_ptr.hbm [resolvable:$true] %s118_s5 }
   0xe   :  { %v51_v5 = vld [vmem:[#allocation5 + $0x10] sm:$0xff]  ;;  %v50_v6 = vld [vmem:[#allocation5 + $0x8] sm:$0xff]  ;;  %v49_v7 = vld [vmem:[#allocation5] sm:$0xff]  ;;  %s116_s28 = sshll.u32 %s266_s27, 4  ;;  %s268_s6 = smov [#allocation8]   ;;  %s117_s28 = int_to_ptr.vmem [resolvable:$true] %s116_s28 }
   0xf   :  { %74 = vmatpush.msra.mxu0 %v55_v1  ;;  %v48_v8 = vld [vmem:[#allocation2] sm:$0xff]  ;;  %s127_s7 = sshll.u32 %s268_s6, 4  ;;  %s129_s9 = sshll.u32 %s315_s4, 4  ;;  %s128_s7 = int_to_ptr.vmem [resolvable:$true] %s127_s7  ;;  %s130_s9 = int_to_ptr.hbm [resolvable:$true] %s129_s9 }
  0x10   :  { %v153_v9 = vld [vmem:[%s313_s2] ss:$0 sm:$0xff]  ;;  %s267_s2 = smov 96  }
  0x11   :  { %75 = vmatpush.msra.mxu0 %v54_v2 }
  0x13   :  { %76 = vmatpush.msra.mxu0 %v53_v3 }
  0x15   :  { %77 = vmatpush.msra.mxu0 %v52_v4 }
  0x17   :  { %78 = vmatpush.msra.mxu0 %v51_v5 }
  0x19   :  { %79 = vmatpush.msra.mxu0 %v50_v6 }
  0x1b   :  { %80 = vmatpush.msra.mxu0 %v49_v7 }
  0x1c   :  { %145 = vmatmul.msk.f32.vlgmr.msra.gmra.mxu0 %vm61_vm0, %v48_v8 }
  0x99   :  { %v82_v10 = vpop.f32.mrf.mxu0 }
  0x9a   :  { %v83_v11 = vadd.f32 %v153_v9, %v82_v10 }
  0x9c   :  { %v90_v12 = vand.u32 2147483647, %v83_v11  ;;  %86 = vst.msk [vmem:[#allocation7] sm:$0xff] %vm85_vm1, %v83_v11  ;;  %v87_v23 = vmax.f32 %v83_v11, 0.0  ;;  %vm88_vm3 = vcmp.ne.f32.partialorder %v83_v11, %v83_v11 }
  0x9d   :  { %121 = dma.vmem_to_hbm [thread:$0]  %s117_s28, 128, %s119_s5, [#allocation4]  }
  0x9e   :  { %v91_v13 = vsub.f32 0.0, %v90_v12 }
  0xa0   :  { %v92_v14 = vmul.f32 1.442695, %v91_v13 }
  0xa2   :  { %154 = vpow2.f32 %v92_v14 }
  0xa8   :  { %v155_v15 = vpop.eup %154 }
  0xa9   :  { %v94_v16 = vadd.f32 1.0, %v155_v15  ;;  %v97_v17 = vmul.f32 -0.5, %v155_v15  ;;  %v100_v19 = vand.u32 2147483647, %v155_v15 }
  0xab   :  { %156 = vlog2.f32 %v94_v16  ;;  %v98_v18 = vadd.f32 1.0, %v97_v17  ;;  %vm101_vm2 = vcmp.lt.f32.partialorder %v100_v19, 0.0004427343 }
  0xad   :  { %v99_v22 = vmul.f32 %v155_v15, %v98_v18 }
  0xb1   :  { %v157_v20 = vpop.eup %156 }
  0xb2   :  { %v96_v21 = vmul.f32 0.6931472, %v157_v20 }
  0xb4   :  { %v102_v24 = vsel %vm101_vm2, %v99_v22, %v96_v21 }
  0xb5   :  { %v103_v25 = vadd.f32 %v102_v24, %v87_v23 }
  0xb7   :  { %v104_v26 = vsel %vm88_vm3, %v83_v11, %v103_v25 }
  0xb8   :  { %v105_v27 = vadd.f32 1e-07, %v104_v26 }
  0xba   :  { %107 = vrot.lane.b32.xlu0 %v105_v27, %s267_s2 }
 0x12c   :  { %v108_v28 = vpop.permute.xlu0 %107 }
 0x12d   :  { %110 = vst.msk [vmem:[#allocation8] sm:$0xff] %vm85_vm1, %v108_v28 }
 0x12e   :  { %132 = dma.vmem_to_hbm [thread:$0]  %s128_s7, 128, %s130_s9, [#allocation9]  }
 0x12f   :  { %258 = dma.done.wait [#allocation4], 128  }
 0x130   :  { %259 = vsyncadd [#allocation4], 4294967168 }
 0x131   :  { %260 = dma.done.wait [#allocation9], 128  }
 0x132   :  { %261 = vsyncadd [#allocation9], 4294967168 }
 0x133   :  { %141 = vsyncpa [#allocation3], 1 }
 0x134   :  { %142 = vsyncpa [#allocation6], 1 }
 0x135   :  { %143 = vsyncpa [#allocation4], 1 }
 0x136   :  { %144 = vsyncpa [#allocation9], 1 }

</bundles_post_ra>
